<compile_context>
chip_gen: v6e
topology: v6e:2x2x1
jax: 0.10.0
libtpu: 0.0.40
codegen_flags: <defaults>
</compile_context>

<pallas_src>
import math

import jax
import jax.numpy as jnp
from jax.experimental import pallas as pl
from jax.experimental.pallas import tpu as pltpu


def _make_kernel(scale, has_mask, output_attention):
    scale = float(scale)  # Python float -> jaxpr literal (no captured consts)

    def _compute(q_ref, k_ref, v_ref, qm_ref, km_ref, out_ref, attn_ref):
        # Fold the softmax scale into the small (Hb, TL, E) operand instead of
        # scaling the (Hb, TL, S) score matrix. Keep native dtype for the MXU.
        q = q_ref[...] * scale                 # (Hb, TL, E)
        k = k_ref[...]                         # (Hb, S,  E)
        v = v_ref[...]                         # (Hb, S,  D)

        # scores = einsum('hle,hse->hls'): contraction over E expressed
        # directly (no k transpose), f32 accumulation on the MXU.
        s = jnp.einsum('hle,hse->hls', q, k,
                       preferred_element_type=jnp.float32)   # (Hb, TL, S)

        if qm_ref is not None:
            # Build the (TL, S) pad mask on the fly from the 1-D masks.
            valid = (qm_ref[...] != 0) & (km_ref[...] != 0)   # (TL,1)&(1,S)->(TL,S)
            valid = valid[None]                               # (1, TL, S)
            # PyTorch masks the *unscaled* scores with -inf; scale > 0 keeps
            # -inf, so masking the scaled scores is equivalent.
            s = jnp.where(valid, s, -jnp.inf)

        # Row softmax over S (kept in f32 — required on v5e, cheap everywhere).
        m = jnp.max(s, axis=-1, keepdims=True)
        e = jnp.exp(s - m)
        denom = jnp.sum(e, axis=-1, keepdims=True)
        # Exact reciprocal keeps tight numerical parity with the reference
        # (approx=True would move the divide to the EUP if parity is relaxed).
        a = e * pl.reciprocal(denom, approx=False)

        if qm_ref is not None:
            # Matches torch: A.masked_fill(pad_mask == 0, 0) — also zeroes
            # fully-masked query rows (NaN -> 0), like the PyTorch module.
            a = jnp.where(valid, a, 0.0)

        if attn_ref is not None:
            attn_ref[...] = a.astype(attn_ref.dtype)

        # V = einsum('hls,hsd->hld'); feed probabilities in v's dtype so a
        # bf16 value path stays on the MXU fast path.
        p = a if a.dtype == v.dtype else a.astype(v.dtype)
        out = jnp.einsum('hls,hsd->hld', p, v,
                         preferred_element_type=jnp.float32)  # (Hb, TL, D)
        out_ref[...] = out.astype(out_ref.dtype)

    if has_mask and output_attention:
        def kernel(q, k, v, qm, km, out, attn):
            _compute(q, k, v, qm, km, out, attn)
    elif has_mask:
        def kernel(q, k, v, qm, km, out):
            _compute(q, k, v, qm, km, out, None)
    elif output_attention:
        def kernel(q, k, v, out, attn):
            _compute(q, k, v, None, None, out, attn)
    else:
        def kernel(q, k, v, out):
            _compute(q, k, v, None, None, out, None)
    return kernel


def _pick_query_tile(L, target):
    """Largest query tile that divides L and satisfies the (8,128) rule."""
    if L <= target:
        return L
    t = (max(target, 8) // 8) * 8
    while t >= 8:
        if L % t == 0:
            return t
        t -= 8
    return L  # no aligned divisor; fall back to the full length


def _largest_divisor_leq(n, cap):
    cap = max(1, min(n, cap))
    for d in range(cap, 0, -1):
        if n % d == 0:
            return d
    return 1


def full_attention(queries, keys, values, query_mask=None, kv_mask=None,
                   scale=None, output_attention=True):
    """Pallas-TPU implementation of FullAttention.forward (eval mode).

    queries: [B, L, H, E], keys: [B, S, H, E], values: [B, S, H, D]
    query_mask: [B, L] or None, kv_mask: [B, S] or None.
    Returns (V [B, L, H, D], A [B, H, L, S] or None) like the PyTorch module.
    """
    B, L, H, E = queries.shape
    _, S, _, D = values.shape
    sc = float(scale) if scale is not None else 1.0 / math.sqrt(E)
    has_mask = (query_mask is not None) and (kv_mask is not None)

    q_dtype = queries.dtype
    itm = jnp.dtype(q_dtype).itemsize

    # Head-major layout so each grid step gets contiguous (Hb, len, depth) slabs.
    q = jnp.transpose(queries, (0, 2, 1, 3))   # [B, H, L, E]
    k = jnp.transpose(keys, (0, 2, 1, 3))      # [B, H, S, E]
    v = jnp.transpose(values, (0, 2, 1, 3))    # [B, H, S, D]

    # Query tile: as large as possible (amortizes ~0.35us/step pipeline
    # overhead) while keeping the per-head f32 score/prob slabs bounded.
    score_budget = 4 << 20                               # bytes of f32 scores
    tl_target = min(256, max(8, (score_budget // max(4 * S, 1)) // 8 * 8))
    TL = _pick_query_tile(L, tl_target)

    # Batch heads as long as all double-buffered blocks + live f32 temporaries
    # stay within a conservative VMEM budget (fits v7x's 64 MiB too).
    per_head = (2 * (TL * E + S * E + S * D) * itm       # q/k/v blocks (x2 buf)
                + 2 * TL * D * itm                       # V output block
                + (2 * TL * S * itm if output_attention else 0)  # A output block
                + 2 * TL * S * 4)                        # live f32 scores/probs
    budget = 24 << 20
    Hb = _largest_divisor_leq(H, budget // max(per_head, 1))

    grid = (B, H // Hb, L // TL)

    in_specs = [
        pl.BlockSpec((pl.Squeezed(), Hb, TL, E), lambda b, h, l: (b, h, l, 0)),
        pl.BlockSpec((pl.Squeezed(), Hb, S, E), lambda b, h, l: (b, h, 0, 0)),
        pl.BlockSpec((pl.Squeezed(), Hb, S, D), lambda b, h, l: (b, h, 0, 0)),
    ]
    args = [q, k, v]
    if has_mask:
        qm = query_mask.astype(jnp.float32)[:, :, None]   # [B, L, 1]
        km = kv_mask.astype(jnp.float32)[:, None, :]      # [B, 1, S]
        in_specs += [
            pl.BlockSpec((pl.Squeezed(), TL, 1), lambda b, h, l: (b, l, 0)),
            pl.BlockSpec((pl.Squeezed(), 1, S), lambda b, h, l: (b, 0, 0)),
        ]
        args += [qm, km]

    v_spec = pl.BlockSpec((pl.Squeezed(), Hb, TL, D), lambda b, h, l: (b, h, l, 0))
    if output_attention:
        out_shape = (jax.ShapeDtypeStruct((B, H, L, D), q_dtype),
                     jax.ShapeDtypeStruct((B, H, L, S), q_dtype))
        out_specs = (v_spec,
                     pl.BlockSpec((pl.Squeezed(), Hb, TL, S),
                                  lambda b, h, l: (b, h, l, 0)))
    else:
        out_shape = jax.ShapeDtypeStruct((B, H, L, D), q_dtype)
        out_specs = v_spec

    result = pl.pallas_call(
        _make_kernel(sc, has_mask, output_attention),
        out_shape=out_shape,
        grid_spec=pltpu.PrefetchScalarGridSpec(
            num_scalar_prefetch=0,
            grid=grid,
            in_specs=in_specs,
            out_specs=out_specs,
        ),
        compiler_params=pltpu.CompilerParams(
            dimension_semantics=("parallel", "parallel", "parallel")),
    )(*args)

    if output_attention:
        out, attn = result
    else:
        out, attn = result, None

    V = jnp.transpose(out, (0, 2, 1, 3))   # -> [B, L, H, D], contiguous
    return V, attn


def _reference_full_attention(queries, keys, values, query_mask, kv_mask, scale):
    """Plain-JAX reference mirroring the PyTorch forward (eval mode)."""
    B, L, H, E = queries.shape
    _, S, _, D = values.shape
    sc = scale if scale is not None else 1.0 / math.sqrt(E)
    hp = jax.lax.Precision.HIGHEST
    scores = jnp.einsum('blhe,bshe->bhls', queries, keys, precision=hp)
    if query_mask is not None and kv_mask is not None:
        pad = (query_mask[:, :, None] * kv_mask[:, None, :])[:, None, :, :]
        pad = jnp.broadcast_to(pad, scores.shape)
        scores = jnp.where(pad == 0, -jnp.inf, scores)
        A = jax.nn.softmax(sc * scores, axis=-1)
        A = jnp.where(pad == 0, 0.0, A)
    else:
        A = jax.nn.softmax(sc * scores, axis=-1)
    V = jnp.einsum('bhls,bshd->blhd', A, values, precision=hp)
    return V, A


if __name__ == "__main__":
    key = jax.random.PRNGKey(0)
    B, L, S, H, E, D = 2, 8, 8, 2, 16, 16

    kq, kk, kv = jax.random.split(key, 3)
    queries = jax.random.normal(kq, (B, L, H, E), jnp.float32)
    keys = jax.random.normal(kk, (B, S, H, E), jnp.float32)
    values = jax.random.normal(kv, (B, S, H, D), jnp.float32)

    # Deterministic padding masks: batch 1 has its last 2 kv positions padded out.
    query_mask = jnp.ones((B, L), jnp.float32)
    kv_mask = jnp.ones((B, S), jnp.float32).at[1, S - 2:].set(0.0)

    # Masked, with attention-weights output (main path).
    V, A = full_attention(queries, keys, values,
                          query_mask=query_mask, kv_mask=kv_mask,
                          scale=None, output_attention=True)
    V = jax.block_until_ready(V)
    A = jax.block_until_ready(A)

    V_ref, A_ref = _reference_full_attention(queries, keys, values,
                                             query_mask, kv_mask, None)
    assert V.shape == (B, L, H, D) and A.shape == (B, H, L, S)
    assert jnp.allclose(V, V_ref, atol=2e-5, rtol=2e-5)
    assert jnp.allclose(A, A_ref, atol=2e-5, rtol=2e-5)

    # Variant without the (large) attention-weights output.
    V2, A2 = full_attention(queries, keys, values,
                            query_mask=query_mask, kv_mask=kv_mask,
                            scale=None, output_attention=False)
    V2 = jax.block_until_ready(V2)
    assert A2 is None
    assert jnp.allclose(V2, V_ref, atol=2e-5, rtol=2e-5)

    # Variant without masks.
    V3, A3 = full_attention(queries, keys, values, scale=None,
                            output_attention=True)
    V3 = jax.block_until_ready(V3)
    V3_ref, A3_ref = _reference_full_attention(queries, keys, values,
                                               None, None, None)
    assert jnp.allclose(V3, V3_ref, atol=2e-5, rtol=2e-5)
    assert jnp.allclose(A3, A3_ref, atol=2e-5, rtol=2e-5)

    print("KERNEL_OK")
</pallas_src>

<mosaic_0001>
module attributes {stable_mosaic.version = 11 : i64} {
  func.func @kernel(%arg0: i32, %arg1: i32, %arg2: i32, %arg3: memref<1x2x8x16xf32, #tpu.memory_space<vmem>>, %arg4: memref<1x2x8x16xf32, #tpu.memory_space<vmem>>, %arg5: memref<1x2x8x16xf32, #tpu.memory_space<vmem>>, %arg6: memref<1x8x1xf32, #tpu.memory_space<vmem>>, %arg7: memref<1x1x8xf32, #tpu.memory_space<vmem>>, %arg8: memref<1x2x8x16xf32, #tpu.memory_space<vmem>>, %arg9: memref<1x2x8x8xf32, #tpu.memory_space<vmem>>) attributes {dimension_semantics = [#tpu.dimension_semantics<parallel>, #tpu.dimension_semantics<parallel>, #tpu.dimension_semantics<parallel>], iteration_bounds = array<i64: 2, 1, 1>, scalar_prefetch = 0 : i64, scratch_operands = 0 : i64, tpu.core_type = #tpu.core_type<tc>, window_params = [{transform_indices = @transform_0, window_bounds = array<i64: 1, 2, 8, 16>}, {transform_indices = @transform_1, window_bounds = array<i64: 1, 2, 8, 16>}, {transform_indices = @transform_2, window_bounds = array<i64: 1, 2, 8, 16>}, {transform_indices = @transform_3, window_bounds = array<i64: 1, 8, 1>}, {transform_indices = @transform_4, window_bounds = array<i64: 1, 1, 8>}, {transform_indices = @transform_5, window_bounds = array<i64: 1, 2, 8, 16>}, {transform_indices = @transform_6, window_bounds = array<i64: 1, 2, 8, 8>}]} {
    %c0 = arith.constant 0 : index
    %c0_0 = arith.constant 0 : index
    %c0_1 = arith.constant 0 : index
    %c0_2 = arith.constant 0 : index
    %0 = vector.load %arg3[%c0, %c0_0, %c0_1, %c0_2] : memref<1x2x8x16xf32, #tpu.memory_space<vmem>>, vector<1x2x8x16xf32>
    %1 = vector.shape_cast %0 : vector<1x2x8x16xf32> to vector<2x8x16xf32>
    %cst = arith.constant 2.500000e-01 : f32
    %2 = vector.broadcast %cst : f32 to vector<2x8x16xf32>
    %3 = arith.mulf %1, %2 : vector<2x8x16xf32>
    %c0_3 = arith.constant 0 : index
    %c0_4 = arith.constant 0 : index
    %c0_5 = arith.constant 0 : index
    %c0_6 = arith.constant 0 : index
    %4 = vector.load %arg4[%c0_3, %c0_4, %c0_5, %c0_6] : memref<1x2x8x16xf32, #tpu.memory_space<vmem>>, vector<1x2x8x16xf32>
    %5 = vector.shape_cast %4 : vector<1x2x8x16xf32> to vector<2x8x16xf32>
    %c0_7 = arith.constant 0 : index
    %c0_8 = arith.constant 0 : index
    %c0_9 = arith.constant 0 : index
    %c0_10 = arith.constant 0 : index
    %6 = vector.load %arg5[%c0_7, %c0_8, %c0_9, %c0_10] : memref<1x2x8x16xf32, #tpu.memory_space<vmem>>, vector<1x2x8x16xf32>
    %7 = vector.shape_cast %6 : vector<1x2x8x16xf32> to vector<2x8x16xf32>
    "tpu.trace_start"() <{level = 10 : i32, message = "hle,hse->hls"}> : () -> ()
    %cst_11 = arith.constant dense<0.000000e+00> : vector<2x8x8xf32>
    %8 = tpu.matmul %3, %5, %cst_11 {dimension_numbers = #tpu.dot_dimension_numbers<[2], [2], [1], [1], [0, 0, 0, 1, 1, 1], [0], [0]>} : vector<2x8x16xf32>, vector<2x8x16xf32>, vector<2x8x8xf32> -> vector<2x8x8xf32>
    "tpu.trace_stop"() : () -> ()
    %c0_12 = arith.constant 0 : index
    %c0_13 = arith.constant 0 : index
    %c0_14 = arith.constant 0 : index
    %9 = vector.load %arg6[%c0_12, %c0_13, %c0_14] : memref<1x8x1xf32, #tpu.memory_space<vmem>>, vector<1x8x1xf32>
    %10 = vector.shape_cast %9 : vector<1x8x1xf32> to vector<8x1xf32>
    %cst_15 = arith.constant 0.000000e+00 : f32
    %11 = vector.broadcast %cst_15 : f32 to vector<8x1xf32>
    %12 = arith.cmpf one, %10, %11 : vector<8x1xf32>
    %c0_16 = arith.constant 0 : index
    %c0_17 = arith.constant 0 : index
    %c0_18 = arith.constant 0 : index
    %13 = vector.load %arg7[%c0_16, %c0_17, %c0_18] : memref<1x1x8xf32, #tpu.memory_space<vmem>>, vector<1x1x8xf32>
    %14 = vector.shape_cast %13 : vector<1x1x8xf32> to vector<1x8xf32>
    %cst_19 = arith.constant 0.000000e+00 : f32
    %15 = vector.broadcast %cst_19 : f32 to vector<1x8xf32>
    %16 = arith.cmpf one, %14, %15 : vector<1x8xf32>
    %17 = vector.broadcast %12 : vector<8x1xi1> to vector<8x8xi1>
    %18 = vector.broadcast %16 : vector<1x8xi1> to vector<8x8xi1>
    %19 = arith.andi %17, %18 : vector<8x8xi1>
    %20 = vector.shape_cast %19 : vector<8x8xi1> to vector<1x8x8xi1>
    %cst_20 = arith.constant 0xFF800000 : f32
    %21 = vector.shape_cast %20 : vector<1x8x8xi1> to vector<1x8x8xi1>
    %22 = vector.broadcast %21 : vector<1x8x8xi1> to vector<2x8x8xi1>
    %23 = vector.broadcast %cst_20 : f32 to vector<2x8x8xf32>
    %24 = arith.select %22, %8, %23 : vector<2x8x8xi1>, vector<2x8x8xf32>
    %cst_21 = arith.constant dense<0xFF800000> : vector<2x8xf32>
    %25 = vector.multi_reduction <maximumf>, %24, %cst_21 [2] : vector<2x8x8xf32> to vector<2x8xf32>
    %26 = vector.shape_cast %25 : vector<2x8xf32> to vector<2x8x1xf32>
    %27 = vector.broadcast %26 : vector<2x8x1xf32> to vector<2x8x8xf32>
    %28 = arith.subf %24, %27 : vector<2x8x8xf32>
    %29 = math.exp %28 : vector<2x8x8xf32>
    %cst_22 = arith.constant dense<0.000000e+00> : vector<2x8xf32>
    %30 = vector.multi_reduction <add>, %29, %cst_22 [2] : vector<2x8x8xf32> to vector<2x8xf32>
    %31 = vector.shape_cast %30 : vector<2x8xf32> to vector<2x8x1xf32>
    %32 = tpu.reciprocal %31 : vector<2x8x1xf32> -> vector<2x8x1xf32>
    %33 = vector.broadcast %32 : vector<2x8x1xf32> to vector<2x8x8xf32>
    %34 = arith.mulf %29, %33 : vector<2x8x8xf32>
    %cst_23 = arith.constant 0.000000e+00 : f32
    %35 = vector.shape_cast %20 : vector<1x8x8xi1> to vector<1x8x8xi1>
    %36 = vector.broadcast %35 : vector<1x8x8xi1> to vector<2x8x8xi1>
    %37 = vector.broadcast %cst_23 : f32 to vector<2x8x8xf32>
    %38 = arith.select %36, %34, %37 : vector<2x8x8xi1>, vector<2x8x8xf32>
    %c0_24 = arith.constant 0 : index
    %c0_25 = arith.constant 0 : index
    %c0_26 = arith.constant 0 : index
    %c0_27 = arith.constant 0 : index
    %39 = vector.load %arg9[%c0_24, %c0_25, %c0_26, %c0_27] : memref<1x2x8x8xf32, #tpu.memory_space<vmem>>, vector<1x2x8x8xf32>
    %40 = vector.shape_cast %39 : vector<1x2x8x8xf32> to vector<2x8x8xf32>
    %41 = vector.shape_cast %38 : vector<2x8x8xf32> to vector<1x2x8x8xf32>
    tpu.vector_store %arg9[%c0_24, %c0_25, %c0_26, %c0_27], %41 {strides = array<i32>} : memref<1x2x8x8xf32, #tpu.memory_space<vmem>>, vector<1x2x8x8xf32>,
    "tpu.trace_start"() <{level = 10 : i32, message = "hls,hsd->hld"}> : () -> ()
    %cst_28 = arith.constant dense<0.000000e+00> : vector<2x8x16xf32>
    %42 = tpu.matmul %38, %7, %cst_28 {dimension_numbers = #tpu.dot_dimension_numbers<[2], [1], [1], [2], [0, 0, 0, 1, 1, 2], [0], [0]>} : vector<2x8x8xf32>, vector<2x8x16xf32>, vector<2x8x16xf32> -> vector<2x8x16xf32>
    "tpu.trace_stop"() : () -> ()
    %c0_29 = arith.constant 0 : index
    %c0_30 = arith.constant 0 : index
    %c0_31 = arith.constant 0 : index
    %c0_32 = arith.constant 0 : index
    %43 = vector.load %arg8[%c0_29, %c0_30, %c0_31, %c0_32] : memref<1x2x8x16xf32, #tpu.memory_space<vmem>>, vector<1x2x8x16xf32>
    %44 = vector.shape_cast %43 : vector<1x2x8x16xf32> to vector<2x8x16xf32>
    %45 = vector.shape_cast %42 : vector<2x8x16xf32> to vector<1x2x8x16xf32>
    tpu.vector_store %arg8[%c0_29, %c0_30, %c0_31, %c0_32], %45 {strides = array<i32>} : memref<1x2x8x16xf32, #tpu.memory_space<vmem>>, vector<1x2x8x16xf32>,
    return
  }
  func.func @transform_0(%arg0: i32, %arg1: i32, %arg2: i32) -> (i32, i32, i32, i32) {
    %c0_i32 = arith.constant 0 : i32
    %c0_i32_0 = arith.constant 0 : i32
    return %arg0, %arg1, %arg2, %c0_i32 : i32, i32, i32, i32
  }
  func.func @transform_1(%arg0: i32, %arg1: i32, %arg2: i32) -> (i32, i32, i32, i32) {
    %c0_i32 = arith.constant 0 : i32
    %c0_i32_0 = arith.constant 0 : i32
    %c0_i32_1 = arith.constant 0 : i32
    return %arg0, %arg1, %c0_i32, %c0_i32_0 : i32, i32, i32, i32
  }
  func.func @transform_2(%arg0: i32, %arg1: i32, %arg2: i32) -> (i32, i32, i32, i32) {
    %c0_i32 = arith.constant 0 : i32
    %c0_i32_0 = arith.constant 0 : i32
    %c0_i32_1 = arith.constant 0 : i32
    return %arg0, %arg1, %c0_i32, %c0_i32_0 : i32, i32, i32, i32
  }
  func.func @transform_3(%arg0: i32, %arg1: i32, %arg2: i32) -> (i32, i32, i32) {
    %c0_i32 = arith.constant 0 : i32
    %c0_i32_0 = arith.constant 0 : i32
    return %arg0, %arg2, %c0_i32 : i32, i32, i32
  }
  func.func @transform_4(%arg0: i32, %arg1: i32, %arg2: i32) -> (i32, i32, i32) {
    %c0_i32 = arith.constant 0 : i32
    %c0_i32_0 = arith.constant 0 : i32
    %c0_i32_1 = arith.constant 0 : i32
    return %arg0, %c0_i32, %c0_i32_0 : i32, i32, i32
  }
  func.func @transform_5(%arg0: i32, %arg1: i32, %arg2: i32) -> (i32, i32, i32, i32) {
    %c0_i32 = arith.constant 0 : i32
    %c0_i32_0 = arith.constant 0 : i32
    return %arg0, %arg1, %arg2, %c0_i32 : i32, i32, i32, i32
  }
  func.func @transform_6(%arg0: i32, %arg1: i32, %arg2: i32) -> (i32, i32, i32, i32) {
    %c0_i32 = arith.constant 0 : i32
    %c0_i32_0 = arith.constant 0 : i32
    return %arg0, %arg1, %arg2, %c0_i32 : i32, i32, i32, i32
  }
}

</mosaic_0001>

<bundles_post_ra>
// kernel: tpu_custom_call.1
= control target key start
LH: loop header
LB: loop body
LE: loop exit
PB: predicated region body
PF: predicated region fallthrough
CT: control target
= control target key end

     0   :  { %s1750_s0 = inlined_call_operand.hbm [shape: f32[2,2,8,16], index: 0, kind: input, shape index: {}]   ;;  %s1751_s1 = inlined_call_operand.hbm [shape: f32[2,2,8,16], index: 1, kind: input, shape index: {}]   ;;  %s1752_s2 = inlined_call_operand.hbm [shape: f32[2,2,8,16], index: 2, kind: input, shape index: {}]   ;;  %s1753_s3 = inlined_call_operand.vmem [shape: f32[2,8,1], index: 3, kind: input, shape index: {}]   ;;  %s1754_s4 = inlined_call_operand.vmem [shape: f32[2,1,8], index: 4, kind: input, shape index: {}]   ;;  %s1755_s5 = inlined_call_operand.hbm [shape: f32[2,2,8,16], index: 5, kind: output, shape index: {0}]   ;;  %s1756_s6 = inlined_call_operand.hbm [shape: f32[2,2,8,8], index: 6, kind: output, shape index: {1}]  }
   0x1   :  { %1765 = sst [smem:[#allocation20_spill]] %s1751_s1 }
   0x2   :  { %1766 = sst [smem:[#allocation21_spill]] %s1755_s5 }
   0x3   :  { %12 = vsyncpa [#allocation3], 0 }
   0x4   :  { %14 = vsyncpa [#allocation3 + $0x1], 0 }
   0x5   :  { %15 = vsyncpa [#allocation6], 0 }
   0x6   :  { %17 = vsyncpa [#allocation6 + $0x1], 0 }
   0x7   :  { %18 = vsyncpa [#allocation4], 0 }
   0x8   :  { %20 = vsyncpa [#allocation4 + $0x1], 0 }
   0x9   :  { %21 = vsyncpa [#allocation10], 0 }
   0xa   :  { %23 = vsyncpa [#allocation10 + $0x1], 0  ;;  %s1452_s21 = smov 0   ;;  %s1454_s22 = smov 0  }
   0xb   :  { %s1456_s23 = smov 0   ;;  %s1458_s24 = smov 0  }
   0xc   :  { %s1460_s25 = smov 0   ;;  %s1462_s26 = smov 0  }
   0xd LB: > { %1767 = sst [smem:[#allocation15_spill]] %s1383_s21  ;;  %s1483_s27 = sadd.s32 4294967295, %s1403_s26   ;;  %s1403_s26 = sphi %s1462_s26, %s29_s26   ;;  %s1399_s25 = sphi %s1460_s25, %s1789_s25   ;;  %s1395_s24 = sphi %s1458_s24, %s1788_s24   ;;  %s1391_s23 = sphi %s1456_s23, %s1792_s23   ;;  %s1387_s22 = sphi %s1454_s22, %s1791_s22   ;;  %s1383_s21 = sphi %s1452_s21, %s1790_s21  }
   0xe   : > { %1768 = sst [smem:[#allocation16_spill]] %s1399_s25  ;;  %s1046_s28 = sadd.s32 4294967294, %s1403_s26  }
   0xf   : > { %s48_s29 = sadd.s32 1, %s1399_s25  ;;  %s59_s30 = sadd.s32 1, %s1391_s23 }
  0x10   : > { %p50_p0 = scmp.ge.s32.totalorder %s48_s29, 2  ;;  %p66_p1 = scmp.ne.s32.totalorder %s1391_s23, %s1387_s22 }
  0x11   : > { %p67_p2 = scmp.eq.s32.totalorder %s1403_s26, 0  ;;  %p72_p3 = scmp.ne.s32.totalorder %s1387_s22, %s1383_s21 }
  0x12   : > { %s1794_s29 = smov (%p50_p0, %s48_s29), 0  ;;  %p73_p5 = scmp.eq.s32.totalorder %s1483_s27, 0 }
  0x13   : > { %1769 = sst [smem:[#allocation17_spill]] %s1794_s29  ;;  %p1495_p4 = por %p67_p2, %p66_p1 }
  0x14   : > { %s52_s8 = ssub.s32 %s1399_s25, %s1794_s29  ;;  %p210_p6 = scmp.eq.s32.totalorder %s1483_s27, 1 }
  0x15   : > { %p57_p7 = scmp.eq.s32.totalorder %s52_s8, 0  ;;  %p1503_p8 = por %p73_p5, %p72_p3 }
  0x16   : > { %p1507_p9 = por %p210_p6, %p66_p1  ;;  %p216_p10 = scmp.eq.s32.totalorder %s1046_s28, 1 }
  0x17   : > { %s1512_s11 = scalar_select %p57_p7, %s1391_s23, %s59_s30  }
  0x18   : > { %p1514_p11 = por %p216_p10, %p72_p3  ;;  %p1139_p13 = scmp.lt.s32.totalorder %s1403_s26, 2 }
  0x19   : > { %1773 = sst [smem:[#allocation18_spill]] %s1512_s11  ;;  %s1757_s13 = sand.u32 1, %s1391_s23  }
  0x1a   : > { %s1774_s12 = scalar_select %p1514_p11, 1, 0 }
  0x1b   : > { %s1523_s14 = sshll.u32 %s1757_s13, 4  ;;  %s1526_s15 = sshll.u32 %s1399_s25, 8 }
  0x1c   : > { %1775 = sst [smem:[#allocation19_spill]] %s1774_s12  ;;  %p1530_p0 = pnand %p1139_p13, %p1495_p4 }
  0x1d   : > { %s290_s17 = sand.u32 1, %s1403_s26   ;;  %s1777_s1 = sld [smem:[#allocation20_spill]] }
  0x1e   : > { %s294_s28 = scalar_lea.vmem [#allocation5], %s1523_s14  ;;  %p1058_p1 = scmp.ge.s32.totalorder %s1403_s26, 1 }
  0x1f   : > { %s303_s30 = sshll.u32 %s294_s28, 4  ;;  %p350_p2 = scmp.lt.s32.totalorder %s1403_s26, 3  ;;  %s304_s30 = int_to_ptr.vmem [resolvable:$true] %s303_s30 }
  0x20   : > { %s1542_s8 = scalar_lea.sflag [#allocation6], %s290_s17  ;;  %p1207_p3 = pneg %p1530_p0 }
  0x21   : > { %s1218_s7 = scalar_lea.vmem %s304_s30, 256  ;;  %s1405_s13 = smov [#allocation5]  }
  0x22   : > { %p1219_p4 = scmp.ne.s32.totalorder %s304_s30, %s1218_s7  ;;  %s1223_s29 = sshll.u32 %s1405_s13, 4  ;;  %s1224_s29 = int_to_ptr.vmem [resolvable:$false] %s1223_s29 }
  0x23   : > { %s302_s20 = scalar_lea.hbm %s1777_s1, %s1526_s15  ;;  %s1225_s18 = scalar_lea.vmem %s1224_s29, 512 }
  0x24   : > { %p1221_p5 = pnand %p1219_p4, %p1207_p3  ;;  %p1226_p7 = scmp.lt.s32.totalorder %s304_s30, %s1224_s29 }
  0x25   : > { %p1227_p10 = scmp.lt.s32.totalorder %s1225_s18, %s1218_s7 }
  0x26   : > { %p1222_p6 = pneg %p1221_p5 }
  0x27   : > { %p1228_p13 = por %p1227_p10, %p1226_p7 }
  0x29   : > { %p1229_p12 = pnand %p1228_p13, %p1222_p6 }
  0x2b   : > { %1232 = shalt.err (!%p1229_p12)
}
  0x2c   : > { %s1763_s19 = smov 128   ;;  %s1407_s17 = smov 8  }
  0x2d   : > { %1128 = dma.hbm_to_vmem [thread:$0]  (!%p1530_p0), %s302_s20, 256, %s304_s30, %s1542_s8, %s1763_s19, %s1763_s19, %s1407_s17  }
  0x2e   : > { %p1559_p4 = pnand %p1058_p1, %p350_p2  ;;  %s279_s7 = scalar_lea.hbm %s1750_s0, %s1526_s15 }
  0x2f   : > { %s270_s18 = scalar_lea.vmem [#allocation2], %s1523_s14  ;;  %s325_s12 = scalar_lea.hbm %s1752_s2, %s1526_s15 }
  0x30   : > { %s280_s1 = sshll.u32 %s270_s18, 4  ;;  %s1779_s21 = sand.u32 1, %s1391_s23   ;;  %s281_s1 = int_to_ptr.vmem [resolvable:$true] %s280_s1 }
  0x31   : > { %s267_s5 = scalar_lea.sflag [#allocation3], %s1779_s21  ;;  %s1246_s20 = scalar_lea.vmem %s281_s1, 256 }
  0x32   : > { %p1247_p12 = scmp.ne.s32.totalorder %s281_s1, %s1246_s20  ;;  %s1408_s30 = smov [#allocation2]  }
  0x33   : > { %s1251_s19 = sshll.u32 %s1408_s30, 4  ;;  %s1252_s19 = int_to_ptr.vmem [resolvable:$false] %s1251_s19 }
  0x34   : > { %p1249_p1 = pnand %p1247_p12, %p1207_p3  ;;  %s1253_s13 = scalar_lea.vmem %s1252_s19, 512 }
  0x35   : > { %p1254_p5 = scmp.lt.s32.totalorder %s281_s1, %s1252_s19  ;;  %p1255_p6 = scmp.lt.s32.totalorder %s1253_s13, %s1246_s20 }
  0x36   : > { %p1250_p2 = pneg %p1249_p1 }
  0x37   : > { %p1256_p7 = por %p1255_p6, %p1254_p5 }
  0x39   : > { %p1257_p10 = pnand %p1256_p7, %p1250_p2 }
  0x3b   : > { %1260 = shalt.err (!%p1257_p10)
}
  0x3c   : > { %s1780_s25 = smov 128   ;;  %s317_s21 = scalar_lea.vmem [#allocation7], %s1523_s14 }
  0x3d   : > { %1125 = dma.hbm_to_vmem [thread:$0]  (!%p1530_p0), %s279_s7, 256, %s281_s1, %s267_s5, %s1780_s25, %s1780_s25, %s1407_s17  }
  0x3e   : > { %s326_s11 = sshll.u32 %s317_s21, 4  ;;  %s1409_s19 = smov [#allocation7]   ;;  %s327_s11 = int_to_ptr.vmem [resolvable:$true] %s326_s11 }
  0x3f   : > { %s1274_s28 = scalar_lea.vmem %s327_s11, 256  ;;  %s1279_s18 = sshll.u32 %s1409_s19, 4  ;;  %s1280_s18 = int_to_ptr.vmem [resolvable:$false] %s1279_s18 }
  0x40   : > { %p1275_p13 = scmp.ne.s32.totalorder %s327_s11, %s1274_s28  ;;  %s1281_s20 = scalar_lea.vmem %s1280_s18, 512 }
  0x41   : > { %p1282_p2 = scmp.lt.s32.totalorder %s327_s11, %s1280_s18  ;;  %p1283_p5 = scmp.lt.s32.totalorder %s1281_s20, %s1274_s28 }
  0x42   : > { %p1277_p12 = pnand %p1275_p13, %p1207_p3 }
  0x43   : > { %p1284_p6 = por %p1283_p5, %p1282_p2 }
  0x44   : > { %p1278_p1 = pneg %p1277_p12 }
  0x46   : > { %p1285_p7 = pnand %p1284_p6, %p1278_p1 }
  0x48   : > { %1288 = shalt.err (!%p1285_p7)
}
  0x49   : > { %1131 = dma.hbm_to_vmem [thread:$0]  (!%p1530_p0), %s325_s12, 256, %s327_s11, %s1542_s8, %s1780_s25, %s1780_s25, %s1407_s17  }
  0x4a   : > { %354 = sbr.rel (%p1559_p4) target bundleno = 807 (0x327), region = 40  ;;  %s1600_s14 = sand.u32 (!%p1559_p4), 1, %s1387_s22  }
  0x4b   : > { %s1603_s16 = sshll.u32 (!%p1559_p4), %s1600_s14, 4  ;;  %s357_s7 = scalar_lea.sflag (!%p1559_p4), [#allocation3], %s1600_s14 }
  0x4c   : > { %s360_s30 = scalar_lea.vmem (!%p1559_p4), [#allocation2], %s1603_s16 }
  0x4f   : > { %1366 = dma.done.wait (%p1503_p8), %s357_s7, 256  }
  0x50   : > { %1368 = vsyncadd (%p1503_p8), %s357_s7, 4294967040  ;;  %s365_s12 = sand.u32 1, %s1483_s27   ;;  %s369_s8 = scalar_lea.vmem [#allocation5], %s1603_s16 }
  0x51   : > { %s366_s15 = scalar_lea.sflag [#allocation6], %s365_s12 }
  0x52   : > { %1370 = dma.done.wait (%p1503_p8), %s366_s15, 512  }
  0x53   : > { %1372 = vsyncadd (%p1503_p8), %s366_s15, 4294966784  ;;  %p435_p0 = scmp.lt.s32.totalorder %s1395_s24, 1  ;;  %v1410_v0 = vmov 0.0   ;;  %vm1411_vm0 = vmmov 0   ;;  %v1412_v1 = vmov 0   ;;  %vm455_vm1 = vcmask 130048  }
  0x54   : > { %1092 = vmatprep.subr.mxu0 %v1410_v0  ;;  %1097 = vmatprep.subr.mxu1 %v1410_v0  ;;  %v451_v2 = vld [vmem:[%s369_s8] sm:$0xff]  ;;  %v452_v3 = vld [vmem:[%s369_s8 + $0x8] sm:$0xff]  ;;  %v618_v12 = vlaneseq  ;;  %vm628_vm7 = vcmask 64512   ;;  %s378_s28 = scalar_lea.vmem [#allocation7], %s1603_s16  ;;  %s431_s19 = scalar_lea.vmem [#allocation9], %s1603_s16 }
  0x55   : > { %1094 = vmatprep.mubr.msk.f32.mxu0 %vm1411_vm0, %v1410_v0  ;;  %1099 = vmatprep.mubr.msk.f32.mxu1 %vm1411_vm0, %v1410_v0  ;;  %s436_s17 = scalar_select %p435_p0, %s1395_s24, 1  ;;  %v447_v4 = vld [vmem:[%s360_s30] sm:$0xff]  ;;  %v448_v6 = vld [vmem:[%s360_s30 + $0x8] sm:$0xff] }
  0x56   : > { %1196 = vset.pattern.permute.xlu0 %v1412_v1  ;;  %1093 = vmatpush3.xpose.msk.msra.mxu0 %vm455_vm1, %v451_v2  ;;  %v449_v5 = vmul.f32 0.25, %v447_v4  ;;  %v450_v9 = vmul.f32 0.25, %v448_v6  ;;  %v619_v13 = vshrl.u32 %v618_v12, 7  ;;  %v453_v36 = vld [vmem:[%s378_s28] sm:$0xff]  ;;  %v454_v37 = vld [vmem:[%s378_s28 + $0x8] sm:$0xff]  ;;  %s1082_s18 = sshll.u32 %s1395_s24, 8 }
  0x57   : > { %s1064_s27 = sshll.u32 %s436_s17, 3  ;;  %s444_s11 = scalar_lea.vmem %s1754_s4, %s436_s17  ;;  %1098 = vmatpush3.xpose.msk.msra.mxu1 %vm455_vm1, %v452_v3  ;;  %1102 = vmatprep.subr.mxu0 %v1410_v0 }
  0x58   : > { %s441_s9 = scalar_lea.vmem %s1753_s3, %s1064_s27  ;;  %v610_v8 = vld [vmem:[%s444_s11] sm:$0x1]  ;;  %1107 = vmatprep.subr.mxu1 %v1410_v0  ;;  %v620_v14 = vsub.s32 0, %v619_v13  ;;  %s844_s20 = sshll.u32 %s431_s19, 4  ;;  %s1663_s20 = int_to_ptr.vmem [resolvable:$true] %s844_s20 }
  0x59   : > { %v608_v7 = vld [vmem:[%s441_s9] sm:$0xff]  ;;  %vm611_vm3 = vcmp.ne.f32.partialorder %v610_v8, 0.0  ;;  %1095 = vmatmul.mubr.msk.f32.vlgmr.msra.gmra.mxu0 %vm455_vm1, %v449_v5  ;;  %s1661_s7 = scalar_lea.hbm %s1756_s6, %s1082_s18  ;;  %s809_s30 = scalar_lea.sflag [#allocation10], %s1600_s14 }
  0x5a   : > { %vm609_vm2 = vcmp.ne.f32.partialorder %v608_v7, 0.0  ;;  %v617_v11 = vsel %vm611_vm3, 1, %v1412_v1  ;;  %1100 = vmatmul.mubr.msk.f32.vlgmr.msra.gmra.mxu1 %vm455_vm1, %v450_v9  ;;  %1104 = vmatprep.mubr.msk.f32.mxu0 %vm1411_vm0, %v1410_v0  ;;  %s1289_s12 = scalar_lea.vmem %s1663_s20, 256  ;;  %s1413_s15 = smov [#allocation9]  }
  0x5b   : > { %v612_v10 = vsel %vm609_vm2, 1, %v1412_v1  ;;  %1109 = vmatprep.mubr.msk.f32.mxu1 %vm1411_vm0, %v1410_v0  ;;  %v621_v15 = vrot.slane %v617_v11, %v620_v14  ;;  %1103 = vmatpush3.msra.mxu0 %v453_v36  ;;  %p1290_p8 = scmp.ne.s32.totalorder %s1663_s20, %s1289_s12  ;;  %s1293_s8 = sshll.u32 %s1413_s15, 4  ;;  %s1294_s8 = int_to_ptr.vmem [resolvable:$false] %s1293_s8 }
  0x5c   : > { %614 = vperm.xlu0 %1196, %v612_v10   ;;  %1108 = vmatpush3.msra.mxu1 %v454_v37  ;;  %s1295_s17 = scalar_lea.vmem %s1294_s8, 512  ;;  %p1296_p10 = scmp.lt.s32.totalorder %s1663_s20, %s1294_s8 }
  0x5d   : > { %vm622_vm4 = vcmp.eq.s32.totalorder %v621_v15, 1  ;;  %p1291_p3 = pnand %p1290_p8, %p1507_p9  ;;  %p1297_p13 = scmp.lt.s32.totalorder %s1295_s17, %s1289_s12 }
  0x5f   : > { %p1292_p4 = pneg %p1291_p3  ;;  %p1298_p12 = por %p1297_p13, %p1296_p10 }
  0x61   : > { %p1299_p1 = pnand %p1298_p12, %p1292_p4 }
  0xd7   : > { %v615_v16 = vpop.permute.xlu0 %614 }
  0xd8   : > { %vm616_vm5 = vcmp.eq.s32.totalorder %v615_v16, 1 }
  0xd9   : > { %vm1633_vm6 = vmand %vm616_vm5, %vm622_vm4 }
 0x119   : > { %v528_v18 = vpop.f32.mrf.mxu0 }
 0x11a   : > { %v604_v19 = vpop.f32.mrf.mxu1  ;;  %v626_v20 = vsel %vm1633_vm6, %v528_v18, -inf }
 0x11b   : > { %v627_v21 = vsel %vm1633_vm6, %v604_v19, -inf  ;;  %v1096_v22 = vpop.f32.mrf.mxu0  ;;  %v629_v24 = vsel %vm628_vm7, %v626_v20, -inf }
 0x11c   : > { %v632_v23 = vsel %vm628_vm7, %v627_v21, -inf  ;;  %v1101_v25 = vpop.f32.mrf.mxu1  ;;  %630 = vmax.xlane.f32.xlu0 %v629_v24 }
 0x11d   : > { %633 = vmax.xlane.f32.xlu1 %v632_v23 }
 0x1a5   : > { %v631_v27 = vpop.xlane.xlu0 %630 }
 0x1a6   : > { %v634_v26 = vpop.xlane.xlu1 %633  ;;  %v635_v29 = vsub.f32 %v626_v20, %v631_v27 }
 0x1a7   : > { %v636_v28 = vsub.f32 %v627_v21, %v634_v26 }
 0x1a8   : > { %v637_v30 = vmul.f32 1.442695, %v635_v29 }
 0x1a9   : > { %v639_v31 = vmul.f32 1.442695, %v636_v28 }
 0x1aa   : > { %1197 = vpow2.f32 %v637_v30 }
 0x1ab   : > { %1199 = vpow2.f32 %v639_v31 }
 0x1b7   : > { %v1198_v32 = vpop.eup %1197 }
 0x1b8   : > { %v641_v33 = vsel %vm628_vm7, %v1198_v32, 0.0  ;;  %v1200_v34 = vpop.eup %1199 }
 0x1b9   : > { %642 = vadd.xlane.f32.xlu1 %v641_v33  ;;  %v644_v35 = vsel %vm628_vm7, %v1200_v34, 0.0 }
 0x1bd   : > { %645 = vadd.xlane.f32.xlu1 %v644_v35 }
 0x242   : > { %v643_v38 = vpop.xlane.xlu1 %642 }
 0x243   : > { %1201 = vrcp.f32 %v643_v38 }
 0x246   : > { %v646_v39 = vpop.xlane.xlu1 %645 }
 0x247   : > { %1203 = vrcp.f32 %v646_v39 }
 0x250   : > { %v1202_v40 = vpop.eup %1201 }
 0x251   : > { %v649_v41 = vmul.f32 %v1202_v40, %v1198_v32 }
 0x253   : > { %v651_v42 = vsel %vm1633_vm6, %v649_v41, 0.0 }
 0x254   : > { %v1204_v43 = vpop.eup %1203  ;;  %653 = vst.msk [vmem:[%s431_s19] sm:$0xff] %vm628_vm7, %v651_v42  ;;  %1105 = vmatmul.mubr.msk.f32.vlgmr.msra.gmra.mxu0 %vm628_vm7, %v651_v42 }
 0x255   : > { %v650_v44 = vmul.f32 %v1204_v43, %v1200_v34 }
 0x257   : > { %v652_v45 = vsel %vm1633_vm6, %v650_v44, 0.0 }
 0x258   : > { %654 = vst.msk [vmem:[%s431_s19 + $0x8] sm:$0xff] %vm628_vm7, %v652_v45  ;;  %1110 = vmatmul.mubr.msk.f32.vlgmr.msra.gmra.mxu1 %vm628_vm7, %v652_v45 }
 0x259   : > { %1302 = shalt.err (!%p1299_p1)
}
 0x25a   : > { %s1303_s27 = scalar_lea.hbm %s1661_s7, 256  ;;  %s1307_s9 = scalar_lea.hbm %s1756_s6, 512 }
 0x25b   : > { %p1304_p2 = scmp.ne.s32.totalorder %s1661_s7, %s1303_s27  ;;  %p1308_p7 = scmp.lt.s32.totalorder %s1661_s7, %s1756_s6 }
 0x25c   : > { %p1309_p0 = scmp.lt.s32.totalorder %s1307_s9, %s1303_s27 }
 0x25d   : > { %p1305_p5 = pnand %p1304_p2, %p1507_p9 }
 0x25e   : > { %p1310_p8 = por %p1309_p0, %p1308_p7 }
 0x25f   : > { %p1306_p6 = pneg %p1305_p5 }
 0x261   : > { %p1311_p3 = pnand %p1310_p8, %p1306_p6 }
 0x263   : > { %1314 = shalt.err (!%p1311_p3)
}
 0x264   : > { %s1414_s11 = smov 128   ;;  %s1415_s28 = smov 8  }
 0x265   : > { %1119 = dma.vmem_to_hbm [thread:$0]  (%p1507_p9), %s1663_s20, 256, %s1661_s7, %s809_s30, %s1414_s11, %s1414_s11, %s1415_s28  }
 0x266   : > { %s424_s19 = scalar_lea.vmem [#allocation8], %s1603_s16  ;;  %s1783_s15 = sld [smem:[#allocation21_spill]] }
 0x267   : > { %s825_s1 = sshll.u32 %s424_s19, 4  ;;  %s804_s16 = scalar_lea.sflag [#allocation4], %s1600_s14  ;;  %s1693_s1 = int_to_ptr.vmem [resolvable:$true] %s825_s1 }
 0x268   : > { %s1315_s20 = scalar_lea.vmem %s1693_s1, 256  ;;  %s1416_s7 = smov [#allocation8]  }
 0x269   : > { %p1316_p4 = scmp.ne.s32.totalorder %s1693_s1, %s1315_s20  ;;  %s1319_s30 = sshll.u32 %s1416_s7, 4  ;;  %s1320_s30 = int_to_ptr.vmem [resolvable:$false] %s1319_s30 }
 0x26a   : > { %s1321_s17 = scalar_lea.vmem %s1320_s30, 512  ;;  %p1322_p12 = scmp.lt.s32.totalorder %s1693_s1, %s1320_s30 }
 0x26b   : > { %p1317_p10 = pnand %p1316_p4, %p1507_p9  ;;  %p1323_p1 = scmp.lt.s32.totalorder %s1321_s17, %s1315_s20 }
 0x26c   : > { %s1700_s8 = scalar_lea.hbm %s1783_s15, %s1082_s18 }
 0x26d   : > { %p1318_p13 = pneg %p1317_p10  ;;  %p1324_p2 = por %p1323_p1, %p1322_p12 }
 0x26f   : > { %p1325_p5 = pnand %p1324_p2, %p1318_p13 }
 0x314   : > { %v724_v46 = vpop.f32.mrf.mxu0 }
 0x315   : > { %801 = vst.msk [vmem:[%s424_s19] sm:$0xff] %vm455_vm1, %v724_v46 }
 0x316   : > { %v1106_v47 = vpop.f32.mrf.mxu0 }
 0x318   : > { %v797_v48 = vpop.f32.mrf.mxu1 }
 0x319   : > { %802 = vst.msk [vmem:[%s424_s19 + $0x8] sm:$0xff] %vm455_vm1, %v797_v48 }
 0x31a   : > { %v1111_v49 = vpop.f32.mrf.mxu1 }
 0x31b   : > { %1328 = shalt.err (!%p1325_p5)
}
 0x31c   : > { %s1329_s24 = scalar_lea.hbm %s1700_s8, 256  ;;  %s1333_s27 = scalar_lea.hbm %s1783_s15, 512 }
 0x31d   : > { %p1330_p6 = scmp.ne.s32.totalorder %s1700_s8, %s1329_s24  ;;  %p1334_p8 = scmp.lt.s32.totalorder %s1700_s8, %s1783_s15 }
 0x31e   : > { %p1335_p3 = scmp.lt.s32.totalorder %s1333_s27, %s1329_s24 }
 0x31f   : > { %p1331_p7 = pnand %p1330_p6, %p1507_p9 }
 0x320   : > { %p1336_p4 = por %p1335_p3, %p1334_p8 }
 0x321   : > { %p1332_p0 = pneg %p1331_p7 }
 0x323   : > { %p1337_p10 = pnand %p1336_p4, %p1332_p0 }
 0x325   : > { %1340 = shalt.err (!%p1337_p10)
}
 0x326   : > { %1118 = dma.vmem_to_hbm [thread:$0]  (%p1507_p9), %s1693_s1, 256, %s1700_s8, %s804_s16, %s1414_s11, %s1414_s11, %s1415_s28  }
 0x327 PF: > { %s1784_s9 = sld [smem:[#allocation15_spill]]  ;;  %p1786_p13 = scmp.ge.s32.totalorder %s1403_s26, 2 }
 0x329   : > { %p1133_p12 = pnand %p1786_p13, %p1514_p11 }
 0x32b   : > { %p1134_p1 = pneg %p1133_p12 }
 0x32d   : > { %s859_s21 = sand.u32 1, %s1784_s9  }
 0x32e   : > { %s860_s19 = scalar_lea.sflag [#allocation4], %s859_s21 }
 0x32f   : > { %1374 = dma.done.wait (%p1134_p1), %s860_s19, 256  }
 0x330   : > { %1376 = vsyncadd (%p1134_p1), %s860_s19, 4294967040  ;;  %s869_s5 = scalar_lea.sflag [#allocation10], %s859_s21 }
 0x331   : > { %1378 = dma.done.wait (%p1134_p1), %s869_s5, 256  }
 0x332   : > { %1380 = vsyncadd (%p1134_p1), %s869_s5, 4294967040  ;;  %s29_s26 = sadd.s32 1, %s1403_s26   ;;  %s1787_s10 = sld [smem:[#allocation18_spill]] }
 0x333   : > { %p26_p2 = scmp.ge.s32.totalorder %s29_s26, 4   ;;  %s1788_s24 = sld [smem:[#allocation16_spill]] }
 0x334   : > { %s1789_s25 = sld [smem:[#allocation17_spill]]  ;;  %s1790_s21 = smov %s1387_s22 }
 0x335   : > { %s1791_s22 = smov %s1391_s23  ;;  %28 = sbr.rel (!%p26_p2) target bundleno = 13 (0xd), region = 132 }
 0x338   : > { %s1792_s23 = smov %s1787_s10 }
 0x33a   :  { %874 = vsyncpa [#allocation3], 1 }
 0x33b   :  { %876 = vsyncpa [#allocation3 + $0x1], 1 }
 0x33c   :  { %877 = vsyncpa [#allocation6], 1 }
 0x33d   :  { %879 = vsyncpa [#allocation6 + $0x1], 1 }
 0x33e   :  { %880 = vsyncpa [#allocation4], 1 }
 0x33f   :  { %882 = vsyncpa [#allocation4 + $0x1], 1 }
 0x340   :  { %883 = vsyncpa [#allocation10], 1 }
 0x341   :  { %885 = vsyncpa [#allocation10 + $0x1], 1 }

</bundles_post_ra>
